<compile_context>
chip_gen: v5e
topology: v5e:2x2
jax: 0.10.0
libtpu: 0.0.40
codegen_flags: <defaults>
</compile_context>

<pallas_src>
import functools

import jax
import jax.numpy as jnp
from jax.experimental import pallas as pl
from jax.experimental.pallas import tpu as pltpu

LANE = 128
SUBLANE = 8


def _round_up(x, m):
    return (x + m - 1) // m * m


def _cdiv(a, b):
    return -(-a // b)


def _pad_to(a, shape):
    return jnp.pad(a, [(0, t - s) for s, t in zip(a.shape, shape)])


def _sigmoid_f32(x):
    # sigmoid(x) == 0.5 * (tanh(0.5 * x) + 1): one EUP op + one FMA.
    return 0.5 * (jnp.tanh(0.5 * x) + 1.0)


def _make_fused_kernel(num_mid):
    """Fused MLP kernel: sigmoid((...sigmoid(x@W0+b0)...)@WL+bL).

    Refs:
      x_ref    : (tb, Din_pad)              bf16  input tile
      w_in_ref : (Din_pad, Dh_pad)          bf16
      b_in_ref : (1, Dh_pad)                f32
      w_mid_ref: (num_mid, Dh_pad, Dh_pad)  bf16  (only when num_mid > 0)
      b_mid_ref: (num_mid, 1, Dh_pad)       f32   (only when num_mid > 0)
      w_out_ref: (Dh_pad, Dout_pad)         bf16
      b_out_ref: (1, Dout_pad)              f32
      o_ref    : (tb, Dout_pad)             f32   output tile
      h_ref    : (tb, Dh_pad)               bf16  VMEM-resident activation
    """

    def body(x_ref, w_in_ref, b_in_ref, w_mid_ref, b_mid_ref,
             w_out_ref, b_out_ref, o_ref, h_ref):
        acc = jnp.dot(x_ref[...], w_in_ref[...],
                      preferred_element_type=jnp.float32) + b_in_ref[...]
        h_ref[...] = _sigmoid_f32(acc).astype(h_ref.dtype)
        for l in range(num_mid):  # static unroll; num_mid is trace-time known
            acc = jnp.dot(h_ref[...], w_mid_ref[l],
                          preferred_element_type=jnp.float32) + b_mid_ref[l]
            h_ref[...] = _sigmoid_f32(acc).astype(h_ref.dtype)
        acc = jnp.dot(h_ref[...], w_out_ref[...],
                      preferred_element_type=jnp.float32) + b_out_ref[...]
        o_ref[...] = _sigmoid_f32(acc).astype(o_ref.dtype)

    if num_mid > 0:
        return body

    def body_no_mid(x_ref, w_in_ref, b_in_ref, w_out_ref, b_out_ref,
                    o_ref, h_ref):
        return body(x_ref, w_in_ref, b_in_ref, None, None,
                    w_out_ref, b_out_ref, o_ref, h_ref)

    return body_no_mid


def init_dnn_params(key, input_dim, hidden_dim, output_dim, hidden_layers):
    """Parameter init mirroring the PyTorch module's layer shapes ((in, out) layout)."""
    if hidden_layers == 0:
        raise ValueError("No layers in DNN")
    dims = [input_dim] + [hidden_dim] * hidden_layers + [output_dim]
    params = []
    for i in range(len(dims) - 1):
        key, kw, kb = jax.random.split(key, 3)
        bound = 1.0 / jnp.sqrt(dims[i])
        w = jax.random.uniform(kw, (dims[i], dims[i + 1]), jnp.float32, -bound, bound)
        b = jax.random.uniform(kb, (dims[i + 1],), jnp.float32, -bound, bound)
        params.append((w, b))
    return params


def pack_params(params):
    """Pad each layer to lane-aligned shapes and group them for the fused kernel.

    Returns (w_in, b_in, w_mid, b_mid, w_out, b_out); the *_mid entries are
    None when there are no hidden->hidden layers.  Weights are bf16 (MXU input
    dtype), biases f32.  Zero padding is numerically inert: padded weight rows
    are 0, so the 0.5 produced by sigmoid in padded columns never contaminates
    real outputs, and padded output columns are sliced away in the wrapper.
    """
    w_in, b_in = params[0]
    w_out, b_out = params[-1]
    din, dh = w_in.shape
    dout = w_out.shape[1]
    din_p, dh_p, dout_p = (_round_up(d, LANE) for d in (din, dh, dout))

    w_in_p = _pad_to(w_in, (din_p, dh_p)).astype(jnp.bfloat16)
    b_in_p = _pad_to(b_in.reshape(1, -1), (1, dh_p)).astype(jnp.float32)
    w_out_p = _pad_to(w_out, (dh_p, dout_p)).astype(jnp.bfloat16)
    b_out_p = _pad_to(b_out.reshape(1, -1), (1, dout_p)).astype(jnp.float32)

    mids = params[1:-1]
    if mids:
        w_mid_p = jnp.stack(
            [_pad_to(w, (dh_p, dh_p)) for w, _ in mids]).astype(jnp.bfloat16)
        b_mid_p = jnp.stack(
            [_pad_to(b.reshape(1, -1), (1, dh_p)) for _, b in mids]
        ).astype(jnp.float32)
    else:
        w_mid_p, b_mid_p = None, None
    return w_in_p, b_in_p, w_mid_p, b_mid_p, w_out_p, b_out_p


def _vmem_capacity_bytes():
    # Conservative fallback: v7x has 64 MiB per TensorCore (v5e/v6e: 128 MiB).
    try:
        return int(pltpu.get_tpu_info().vmem_capacity_bytes)
    except Exception:
        return 64 * 1024 * 1024


def _choose_tb(batch, din_p, dh_p, dout_p, resident_weight_bytes, vmem_budget):
    # Bytes per batch row resident in VMEM: double-buffered bf16 input tile,
    # double-buffered f32 output tile, bf16 activation scratch.
    per_row = 2 * din_p * 2 + 2 * dout_p * 4 + dh_p * 2
    avail = max(vmem_budget - resident_weight_bytes, per_row * SUBLANE)
    tb = max(SUBLANE, (avail // per_row) // SUBLANE * SUBLANE)
    tb = min(tb, 2048)                # grid-step overhead well amortized by here
    b_up = _round_up(batch, SUBLANE)
    tb = min(tb, b_up)
    if b_up >= 256:                   # keep >= 2 tiles so both v7x TCs get work
        tb = min(tb, _round_up(_cdiv(b_up, 2), SUBLANE))
    return tb


def _const_spec(shape, single_buffer):
    index_map = lambda i: (0,) * len(shape)
    if single_buffer:
        # Grid-invariant operand: one VMEM buffer is enough (no double buffer).
        return pl.BlockSpec(shape, index_map, pipeline_mode=pl.Buffered(1))
    return pl.BlockSpec(shape, index_map)


@functools.partial(
    jax.jit, static_argnames=("out_dim", "tb", "single_buffer_weights"))
def _dnn_forward_impl(x, packed, out_dim, tb=None, single_buffer_weights=True):
    w_in, b_in, w_mid, b_mid, w_out, b_out = packed
    B, din = x.shape
    din_p, dh_p = w_in.shape
    dout_p = w_out.shape[1]
    num_mid = 0 if w_mid is None else w_mid.shape[0]

    wbuf = 1 if single_buffer_weights else 2
    weight_bytes = wbuf * 2 * (
        w_in.size + w_out.size + (w_mid.size if w_mid is not None else 0))
    bias_bytes = wbuf * 4 * (
        b_in.size + b_out.size + (b_mid.size if b_mid is not None else 0))

    vmem_cap = _vmem_capacity_bytes()
    if tb is None:
        tb = _choose_tb(B, din_p, dh_p, dout_p, weight_bytes + bias_bytes,
                        int(0.75 * vmem_cap))
    Bp = _round_up(B, tb)

    # Scoped-VMEM limit from the actual footprint (+25% headroom); the default
    # scoped limit (16 MiB v5e / 32 MiB v6e, v7x) is far below physical VMEM.
    act_bytes = tb * (2 * din_p * 2 + 2 * dout_p * 4 + dh_p * 2)
    vmem_limit = int(1.25 * (weight_bytes + bias_bytes + act_bytes)) + (2 << 20)
    vmem_limit = max(vmem_limit, 32 << 20)
    vmem_limit = min(vmem_limit, max(vmem_cap - (4 << 20), 32 << 20))

    # Lane/sublane-pad the input only when necessary (no extra HBM pass).
    xp = x.astype(jnp.bfloat16)
    if B != Bp or din != din_p:
        xp = jnp.pad(xp, ((0, Bp - B), (0, din_p - din)))

    in_specs = [pl.BlockSpec((tb, din_p), lambda i: (i, 0)),
                _const_spec((din_p, dh_p), single_buffer_weights),
                _const_spec((1, dh_p), single_buffer_weights)]
    inputs = [xp, w_in, b_in]
    if num_mid:
        in_specs += [_const_spec((num_mid, dh_p, dh_p), single_buffer_weights),
                     _const_spec((num_mid, 1, dh_p), single_buffer_weights)]
        inputs += [w_mid, b_mid]
    in_specs += [_const_spec((dh_p, dout_p), single_buffer_weights),
                 _const_spec((1, dout_p), single_buffer_weights)]
    inputs += [w_out, b_out]

    out = pl.pallas_call(
        _make_fused_kernel(num_mid),
        out_shape=jax.ShapeDtypeStruct((Bp, dout_p), jnp.float32),
        grid_spec=pltpu.PrefetchScalarGridSpec(
            num_scalar_prefetch=0,
            grid=(Bp // tb,),
            in_specs=in_specs,
            out_specs=pl.BlockSpec((tb, dout_p), lambda i: (i, 0)),
            scratch_shapes=[pltpu.VMEM((tb, dh_p), jnp.bfloat16)],
        ),
        compiler_params=pltpu.CompilerParams(
            dimension_semantics=("parallel",),
            vmem_limit_bytes=vmem_limit,
        ),
    )(*inputs)
    return out[:B, :out_dim]


_SINGLE_BUFFER_WEIGHTS = None  # lazily resolved: does this build accept pl.Buffered(1)?


def dnn_forward(x, packed, out_dim, tb=None):
    """Fused MLP forward (inference; dropout is identity as in eval mode)."""
    global _SINGLE_BUFFER_WEIGHTS
    if _SINGLE_BUFFER_WEIGHTS is None:
        try:
            out = _dnn_forward_impl(x, packed, out_dim=out_dim, tb=tb,
                                    single_buffer_weights=True)
            jax.block_until_ready(out)
            _SINGLE_BUFFER_WEIGHTS = True
            return out
        except Exception:
            # This JAX/Mosaic build rejects single-buffered grid-invariant
            # operands: fall back to default (double-buffered) specs.
            _SINGLE_BUFFER_WEIGHTS = False
    return _dnn_forward_impl(x, packed, out_dim=out_dim, tb=tb,
                             single_buffer_weights=_SINGLE_BUFFER_WEIGHTS)


def dnn_forward_ref(x, params):
    deep_x = x
    for w, b in params:
        deep_x = jax.nn.sigmoid(deep_x @ w + b)
    return deep_x


if __name__ == "__main__":
    key = jax.random.PRNGKey(0)
    batch = 8

    configs = [
        # matches the module defaults used previously
        dict(input_dim=32, dnn_hidden_dim=32, dnn_hidden_layers=2,
             output_dim=16, dnn_dropout_rate=0.0, l2_reg_dnn=0.0),
        # exercises the "no hidden->hidden layer" path (hidden_layers == 1)
        dict(input_dim=32, dnn_hidden_dim=32, dnn_hidden_layers=1,
             output_dim=16, dnn_dropout_rate=0.0, l2_reg_dnn=0.0),
    ]

    for cfg in configs:
        key, kx, kp = jax.random.split(key, 3)
        x = jax.random.normal(kx, (batch, cfg["input_dim"]), jnp.float32)
        params = init_dnn_params(kp, cfg["input_dim"], cfg["dnn_hidden_dim"],
                                 cfg["output_dim"], cfg["dnn_hidden_layers"])
        packed = pack_params(params)

        out = dnn_forward(x, packed, cfg["output_dim"])
        out = jax.block_until_ready(out)
        ref = dnn_forward_ref(x, params)

        assert out.shape == (batch, cfg["output_dim"])
        # bf16 matmul inputs + f32 accumulation; sigmoid outputs lie in (0, 1).
        assert jnp.allclose(out, ref, atol=2e-2, rtol=2e-2), float(
            jnp.max(jnp.abs(out - ref)))

    print("KERNEL_OK")
</pallas_src>

<mosaic_0001>
module attributes {stable_mosaic.version = 11 : i64} {
  func.func @body(%arg0: i32, %arg1: memref<8x128xbf16, #tpu.memory_space<vmem>>, %arg2: memref<128x128xbf16, #tpu.memory_space<vmem>>, %arg3: memref<1x128xf32, #tpu.memory_space<vmem>>, %arg4: memref<1x128x128xbf16, #tpu.memory_space<vmem>>, %arg5: memref<1x1x128xf32, #tpu.memory_space<vmem>>, %arg6: memref<128x128xbf16, #tpu.memory_space<vmem>>, %arg7: memref<1x128xf32, #tpu.memory_space<vmem>>, %arg8: memref<8x128xf32, #tpu.memory_space<vmem>>, %arg9: memref<8x128xbf16, #tpu.memory_space<vmem>>) attributes {dimension_semantics = [#tpu.dimension_semantics<parallel>], iteration_bounds = array<i64: 1>, scalar_prefetch = 0 : i64, scratch_operands = 1 : i64, tpu.core_type = #tpu.core_type<tc>, window_params = [{transform_indices = @transform_0, window_bounds = array<i64: 8, 128>}, {pipeline_mode = #tpu.pipeline_mode<synchronous>, transform_indices = @transform_1, window_bounds = array<i64: 128, 128>}, {pipeline_mode = #tpu.pipeline_mode<synchronous>, transform_indices = @transform_2, window_bounds = array<i64: 1, 128>}, {pipeline_mode = #tpu.pipeline_mode<synchronous>, transform_indices = @transform_3, window_bounds = array<i64: 1, 128, 128>}, {pipeline_mode = #tpu.pipeline_mode<synchronous>, transform_indices = @transform_4, window_bounds = array<i64: 1, 1, 128>}, {pipeline_mode = #tpu.pipeline_mode<synchronous>, transform_indices = @transform_5, window_bounds = array<i64: 128, 128>}, {pipeline_mode = #tpu.pipeline_mode<synchronous>, transform_indices = @transform_6, window_bounds = array<i64: 1, 128>}, {transform_indices = @transform_7, window_bounds = array<i64: 8, 128>}]} {
    %c0 = arith.constant 0 : index
    %c0_0 = arith.constant 0 : index
    %0 = vector.load %arg1[%c0, %c0_0] : memref<8x128xbf16, #tpu.memory_space<vmem>>, vector<8x128xbf16>
    %c0_1 = arith.constant 0 : index
    %c0_2 = arith.constant 0 : index
    %1 = vector.load %arg2[%c0_1, %c0_2] : memref<128x128xbf16, #tpu.memory_space<vmem>>, vector<128x128xbf16>
    %cst = arith.constant dense<0.000000e+00> : vector<8x128xf32>
    %2 = tpu.matmul %0, %1, %cst {dimension_numbers = #tpu.dot_dimension_numbers<[1], [0], [0], [1], [0, 0, 1, 1], [], []>} : vector<8x128xbf16>, vector<128x128xbf16>, vector<8x128xf32> -> vector<8x128xf32>
    %c0_3 = arith.constant 0 : index
    %c0_4 = arith.constant 0 : index
    %3 = vector.load %arg3[%c0_3, %c0_4] : memref<1x128xf32, #tpu.memory_space<vmem>>, vector<1x128xf32>
    %4 = vector.broadcast %3 : vector<1x128xf32> to vector<8x128xf32>
    %5 = arith.addf %2, %4 : vector<8x128xf32>
    %cst_5 = arith.constant 5.000000e-01 : f32
    %6 = vector.broadcast %cst_5 : f32 to vector<8x128xf32>
    %7 = arith.mulf %6, %5 : vector<8x128xf32>
    %8 = math.tanh %7 : vector<8x128xf32>
    %cst_6 = arith.constant 1.000000e+00 : f32
    %9 = vector.broadcast %cst_6 : f32 to vector<8x128xf32>
    %10 = arith.addf %8, %9 : vector<8x128xf32>
    %cst_7 = arith.constant 5.000000e-01 : f32
    %11 = vector.broadcast %cst_7 : f32 to vector<8x128xf32>
    %12 = arith.mulf %11, %10 : vector<8x128xf32>
    %13 = arith.truncf %12 : vector<8x128xf32> to vector<8x128xbf16>
    %c0_8 = arith.constant 0 : index
    %c0_9 = arith.constant 0 : index
    %14 = vector.load %arg9[%c0_8, %c0_9] : memref<8x128xbf16, #tpu.memory_space<vmem>>, vector<8x128xbf16>
    tpu.vector_store %arg9[%c0_8, %c0_9], %13 {strides = array<i32>} : memref<8x128xbf16, #tpu.memory_space<vmem>>, vector<8x128xbf16>,
    %c0_10 = arith.constant 0 : index
    %c0_11 = arith.constant 0 : index
    %15 = vector.load %arg9[%c0_10, %c0_11] : memref<8x128xbf16, #tpu.memory_space<vmem>>, vector<8x128xbf16>
    %c0_12 = arith.constant 0 : index
    %c0_13 = arith.constant 0 : index
    %c0_14 = arith.constant 0 : index
    %16 = vector.load %arg4[%c0_12, %c0_13, %c0_14] : memref<1x128x128xbf16, #tpu.memory_space<vmem>>, vector<1x128x128xbf16>
    %17 = vector.shape_cast %16 : vector<1x128x128xbf16> to vector<128x128xbf16>
    %cst_15 = arith.constant dense<0.000000e+00> : vector<8x128xf32>
    %18 = tpu.matmul %15, %17, %cst_15 {dimension_numbers = #tpu.dot_dimension_numbers<[1], [0], [0], [1], [0, 0, 1, 1], [], []>} : vector<8x128xbf16>, vector<128x128xbf16>, vector<8x128xf32> -> vector<8x128xf32>
    %c0_16 = arith.constant 0 : index
    %c0_17 = arith.constant 0 : index
    %c0_18 = arith.constant 0 : index
    %19 = vector.load %arg5[%c0_16, %c0_17, %c0_18] : memref<1x1x128xf32, #tpu.memory_space<vmem>>, vector<1x1x128xf32>
    %20 = vector.shape_cast %19 : vector<1x1x128xf32> to vector<1x128xf32>
    %21 = vector.broadcast %20 : vector<1x128xf32> to vector<8x128xf32>
    %22 = arith.addf %18, %21 : vector<8x128xf32>
    %cst_19 = arith.constant 5.000000e-01 : f32
    %23 = vector.broadcast %cst_19 : f32 to vector<8x128xf32>
    %24 = arith.mulf %23, %22 : vector<8x128xf32>
    %25 = math.tanh %24 : vector<8x128xf32>
    %cst_20 = arith.constant 1.000000e+00 : f32
    %26 = vector.broadcast %cst_20 : f32 to vector<8x128xf32>
    %27 = arith.addf %25, %26 : vector<8x128xf32>
    %cst_21 = arith.constant 5.000000e-01 : f32
    %28 = vector.broadcast %cst_21 : f32 to vector<8x128xf32>
    %29 = arith.mulf %28, %27 : vector<8x128xf32>
    %30 = arith.truncf %29 : vector<8x128xf32> to vector<8x128xbf16>
    %c0_22 = arith.constant 0 : index
    %c0_23 = arith.constant 0 : index
    %31 = vector.load %arg9[%c0_22, %c0_23] : memref<8x128xbf16, #tpu.memory_space<vmem>>, vector<8x128xbf16>
    tpu.vector_store %arg9[%c0_22, %c0_23], %30 {strides = array<i32>} : memref<8x128xbf16, #tpu.memory_space<vmem>>, vector<8x128xbf16>,
    %c0_24 = arith.constant 0 : index
    %c0_25 = arith.constant 0 : index
    %32 = vector.load %arg9[%c0_24, %c0_25] : memref<8x128xbf16, #tpu.memory_space<vmem>>, vector<8x128xbf16>
    %c0_26 = arith.constant 0 : index
    %c0_27 = arith.constant 0 : index
    %33 = vector.load %arg6[%c0_26, %c0_27] : memref<128x128xbf16, #tpu.memory_space<vmem>>, vector<128x128xbf16>
    %cst_28 = arith.constant dense<0.000000e+00> : vector<8x128xf32>
    %34 = tpu.matmul %32, %33, %cst_28 {dimension_numbers = #tpu.dot_dimension_numbers<[1], [0], [0], [1], [0, 0, 1, 1], [], []>} : vector<8x128xbf16>, vector<128x128xbf16>, vector<8x128xf32> -> vector<8x128xf32>
    %c0_29 = arith.constant 0 : index
    %c0_30 = arith.constant 0 : index
    %35 = vector.load %arg7[%c0_29, %c0_30] : memref<1x128xf32, #tpu.memory_space<vmem>>, vector<1x128xf32>
    %36 = vector.broadcast %35 : vector<1x128xf32> to vector<8x128xf32>
    %37 = arith.addf %34, %36 : vector<8x128xf32>
    %cst_31 = arith.constant 5.000000e-01 : f32
    %38 = vector.broadcast %cst_31 : f32 to vector<8x128xf32>
    %39 = arith.mulf %38, %37 : vector<8x128xf32>
    %40 = math.tanh %39 : vector<8x128xf32>
    %cst_32 = arith.constant 1.000000e+00 : f32
    %41 = vector.broadcast %cst_32 : f32 to vector<8x128xf32>
    %42 = arith.addf %40, %41 : vector<8x128xf32>
    %cst_33 = arith.constant 5.000000e-01 : f32
    %43 = vector.broadcast %cst_33 : f32 to vector<8x128xf32>
    %44 = arith.mulf %43, %42 : vector<8x128xf32>
    %c0_34 = arith.constant 0 : index
    %c0_35 = arith.constant 0 : index
    %45 = vector.load %arg8[%c0_34, %c0_35] : memref<8x128xf32, #tpu.memory_space<vmem>>, vector<8x128xf32>
    tpu.vector_store %arg8[%c0_34, %c0_35], %44 {strides = array<i32>} : memref<8x128xf32, #tpu.memory_space<vmem>>, vector<8x128xf32>,
    return
  }
  func.func @transform_0(%arg0: i32) -> (i32, i32) {
    %c0_i32 = arith.constant 0 : i32
    %c0_i32_0 = arith.constant 0 : i32
    return %arg0, %c0_i32 : i32, i32
  }
  func.func @transform_1(%arg0: i32) -> (i32, i32) {
    %c0_i32 = arith.constant 0 : i32
    %c0_i32_0 = arith.constant 0 : i32
    %c0_i32_1 = arith.constant 0 : i32
    return %c0_i32, %c0_i32_0 : i32, i32
  }
  func.func @transform_2(%arg0: i32) -> (i32, i32) {
    %c0_i32 = arith.constant 0 : i32
    %c0_i32_0 = arith.constant 0 : i32
    %c0_i32_1 = arith.constant 0 : i32
    return %c0_i32, %c0_i32_0 : i32, i32
  }
  func.func @transform_3(%arg0: i32) -> (i32, i32, i32) {
    %c0_i32 = arith.constant 0 : i32
    %c0_i32_0 = arith.constant 0 : i32
    %c0_i32_1 = arith.constant 0 : i32
    %c0_i32_2 = arith.constant 0 : i32
    return %c0_i32, %c0_i32_0, %c0_i32_1 : i32, i32, i32
  }
  func.func @transform_4(%arg0: i32) -> (i32, i32, i32) {
    %c0_i32 = arith.constant 0 : i32
    %c0_i32_0 = arith.constant 0 : i32
    %c0_i32_1 = arith.constant 0 : i32
    %c0_i32_2 = arith.constant 0 : i32
    return %c0_i32, %c0_i32_0, %c0_i32_1 : i32, i32, i32
  }
  func.func @transform_5(%arg0: i32) -> (i32, i32) {
    %c0_i32 = arith.constant 0 : i32
    %c0_i32_0 = arith.constant 0 : i32
    %c0_i32_1 = arith.constant 0 : i32
    return %c0_i32, %c0_i32_0 : i32, i32
  }
  func.func @transform_6(%arg0: i32) -> (i32, i32) {
    %c0_i32 = arith.constant 0 : i32
    %c0_i32_0 = arith.constant 0 : i32
    %c0_i32_1 = arith.constant 0 : i32
    return %c0_i32, %c0_i32_0 : i32, i32
  }
  func.func @transform_7(%arg0: i32) -> (i32, i32) {
    %c0_i32 = arith.constant 0 : i32
    %c0_i32_0 = arith.constant 0 : i32
    return %arg0, %c0_i32 : i32, i32
  }
}

module attributes {stable_mosaic.version = 11 : i64} {
  func.func @body(%arg0: i32, %arg1: memref<8x128xbf16, #tpu.memory_space<vmem>>, %arg2: memref<128x128xbf16, #tpu.memory_space<vmem>>, %arg3: memref<1x128xf32, #tpu.memory_space<vmem>>, %arg4: memref<1x128x128xbf16, #tpu.memory_space<vmem>>, %arg5: memref<1x1x128xf32, #tpu.memory_space<vmem>>, %arg6: memref<128x128xbf16, #tpu.memory_space<vmem>>, %arg7: memref<1x128xf32, #tpu.memory_space<vmem>>, %arg8: memref<8x128xf32, #tpu.memory_space<vmem>>, %arg9: memref<8x128xbf16, #tpu.memory_space<vmem>>) attributes {dimension_semantics = [#tpu.dimension_semantics<parallel>], iteration_bounds = array<i64: 1>, scalar_prefetch = 0 : i64, scratch_operands = 1 : i64, tpu.core_type = #tpu.core_type<tc>, window_params = [{transform_indices = @transform_0, window_bounds = array<i64: 8, 128>}, {pipeline_mode = #tpu.pipeline_mode<synchronous>, transform_indices = @transform_1, window_bounds = array<i64: 128, 128>}, {pipeline_mode = #tpu.pipeline_mode<synchronous>, transform_indices = @transform_2, window_bounds = array<i64: 1, 128>}, {pipeline_mode = #tpu.pipeline_mode<synchronous>, transform_indices = @transform_3, window_bounds = array<i64: 1, 128, 128>}, {pipeline_mode = #tpu.pipeline_mode<synchronous>, transform_indices = @transform_4, window_bounds = array<i64: 1, 1, 128>}, {pipeline_mode = #tpu.pipeline_mode<synchronous>, transform_indices = @transform_5, window_bounds = array<i64: 128, 128>}, {pipeline_mode = #tpu.pipeline_mode<synchronous>, transform_indices = @transform_6, window_bounds = array<i64: 1, 128>}, {transform_indices = @transform_7, window_bounds = array<i64: 8, 128>}]} {
    %c0 = arith.constant 0 : index
    %c0_0 = arith.constant 0 : index
    %0 = vector.load %arg1[%c0, %c0_0] : memref<8x128xbf16, #tpu.memory_space<vmem>>, vector<8x128xbf16>
    %c0_1 = arith.constant 0 : index
    %c0_2 = arith.constant 0 : index
    %1 = vector.load %arg2[%c0_1, %c0_2] : memref<128x128xbf16, #tpu.memory_space<vmem>>, vector<128x128xbf16>
    %cst = arith.constant dense<0.000000e+00> : vector<8x128xf32>
    %2 = tpu.matmul %0, %1, %cst {dimension_numbers = #tpu.dot_dimension_numbers<[1], [0], [0], [1], [0, 0, 1, 1], [], []>} : vector<8x128xbf16>, vector<128x128xbf16>, vector<8x128xf32> -> vector<8x128xf32>
    %c0_3 = arith.constant 0 : index
    %c0_4 = arith.constant 0 : index
    %3 = vector.load %arg3[%c0_3, %c0_4] : memref<1x128xf32, #tpu.memory_space<vmem>>, vector<1x128xf32>
    %4 = vector.broadcast %3 : vector<1x128xf32> to vector<8x128xf32>
    %5 = arith.addf %2, %4 : vector<8x128xf32>
    %cst_5 = arith.constant 5.000000e-01 : f32
    %6 = vector.broadcast %cst_5 : f32 to vector<8x128xf32>
    %7 = arith.mulf %6, %5 : vector<8x128xf32>
    %8 = math.tanh %7 : vector<8x128xf32>
    %cst_6 = arith.constant 1.000000e+00 : f32
    %9 = vector.broadcast %cst_6 : f32 to vector<8x128xf32>
    %10 = arith.addf %8, %9 : vector<8x128xf32>
    %cst_7 = arith.constant 5.000000e-01 : f32
    %11 = vector.broadcast %cst_7 : f32 to vector<8x128xf32>
    %12 = arith.mulf %11, %10 : vector<8x128xf32>
    %13 = arith.truncf %12 : vector<8x128xf32> to vector<8x128xbf16>
    %c0_8 = arith.constant 0 : index
    %c0_9 = arith.constant 0 : index
    %14 = vector.load %arg9[%c0_8, %c0_9] : memref<8x128xbf16, #tpu.memory_space<vmem>>, vector<8x128xbf16>
    tpu.vector_store %arg9[%c0_8, %c0_9], %13 {strides = array<i32>} : memref<8x128xbf16, #tpu.memory_space<vmem>>, vector<8x128xbf16>,
    %c0_10 = arith.constant 0 : index
    %c0_11 = arith.constant 0 : index
    %15 = vector.load %arg9[%c0_10, %c0_11] : memref<8x128xbf16, #tpu.memory_space<vmem>>, vector<8x128xbf16>
    %c0_12 = arith.constant 0 : index
    %c0_13 = arith.constant 0 : index
    %c0_14 = arith.constant 0 : index
    %16 = vector.load %arg4[%c0_12, %c0_13, %c0_14] : memref<1x128x128xbf16, #tpu.memory_space<vmem>>, vector<1x128x128xbf16>
    %17 = vector.shape_cast %16 : vector<1x128x128xbf16> to vector<128x128xbf16>
    %cst_15 = arith.constant dense<0.000000e+00> : vector<8x128xf32>
    %18 = tpu.matmul %15, %17, %cst_15 {dimension_numbers = #tpu.dot_dimension_numbers<[1], [0], [0], [1], [0, 0, 1, 1], [], []>} : vector<8x128xbf16>, vector<128x128xbf16>, vector<8x128xf32> -> vector<8x128xf32>
    %c0_16 = arith.constant 0 : index
    %c0_17 = arith.constant 0 : index
    %c0_18 = arith.constant 0 : index
    %19 = vector.load %arg5[%c0_16, %c0_17, %c0_18] : memref<1x1x128xf32, #tpu.memory_space<vmem>>, vector<1x1x128xf32>
    %20 = vector.shape_cast %19 : vector<1x1x128xf32> to vector<1x128xf32>
    %21 = vector.broadcast %20 : vector<1x128xf32> to vector<8x128xf32>
    %22 = arith.addf %18, %21 : vector<8x128xf32>
    %cst_19 = arith.constant 5.000000e-01 : f32
    %23 = vector.broadcast %cst_19 : f32 to vector<8x128xf32>
    %24 = arith.mulf %23, %22 : vector<8x128xf32>
    %25 = math.tanh %24 : vector<8x128xf32>
    %cst_20 = arith.constant 1.000000e+00 : f32
    %26 = vector.broadcast %cst_20 : f32 to vector<8x128xf32>
    %27 = arith.addf %25, %26 : vector<8x128xf32>
    %cst_21 = arith.constant 5.000000e-01 : f32
    %28 = vector.broadcast %cst_21 : f32 to vector<8x128xf32>
    %29 = arith.mulf %28, %27 : vector<8x128xf32>
    %30 = arith.truncf %29 : vector<8x128xf32> to vector<8x128xbf16>
    %c0_22 = arith.constant 0 : index
    %c0_23 = arith.constant 0 : index
    %31 = vector.load %arg9[%c0_22, %c0_23] : memref<8x128xbf16, #tpu.memory_space<vmem>>, vector<8x128xbf16>
    tpu.vector_store %arg9[%c0_22, %c0_23], %30 {strides = array<i32>} : memref<8x128xbf16, #tpu.memory_space<vmem>>, vector<8x128xbf16>,
    %c0_24 = arith.constant 0 : index
    %c0_25 = arith.constant 0 : index
    %32 = vector.load %arg9[%c0_24, %c0_25] : memref<8x128xbf16, #tpu.memory_space<vmem>>, vector<8x128xbf16>
    %c0_26 = arith.constant 0 : index
    %c0_27 = arith.constant 0 : index
    %33 = vector.load %arg6[%c0_26, %c0_27] : memref<128x128xbf16, #tpu.memory_space<vmem>>, vector<128x128xbf16>
    %cst_28 = arith.constant dense<0.000000e+00> : vector<8x128xf32>
    %34 = tpu.matmul %32, %33, %cst_28 {dimension_numbers = #tpu.dot_dimension_numbers<[1], [0], [0], [1], [0, 0, 1, 1], [], []>} : vector<8x128xbf16>, vector<128x128xbf16>, vector<8x128xf32> -> vector<8x128xf32>
    %c0_29 = arith.constant 0 : index
    %c0_30 = arith.constant 0 : index
    %35 = vector.load %arg7[%c0_29, %c0_30] : memref<1x128xf32, #tpu.memory_space<vmem>>, vector<1x128xf32>
    %36 = vector.broadcast %35 : vector<1x128xf32> to vector<8x128xf32>
    %37 = arith.addf %34, %36 : vector<8x128xf32>
    %cst_31 = arith.constant 5.000000e-01 : f32
    %38 = vector.broadcast %cst_31 : f32 to vector<8x128xf32>
    %39 = arith.mulf %38, %37 : vector<8x128xf32>
    %40 = math.tanh %39 : vector<8x128xf32>
    %cst_32 = arith.constant 1.000000e+00 : f32
    %41 = vector.broadcast %cst_32 : f32 to vector<8x128xf32>
    %42 = arith.addf %40, %41 : vector<8x128xf32>
    %cst_33 = arith.constant 5.000000e-01 : f32
    %43 = vector.broadcast %cst_33 : f32 to vector<8x128xf32>
    %44 = arith.mulf %43, %42 : vector<8x128xf32>
    %c0_34 = arith.constant 0 : index
    %c0_35 = arith.constant 0 : index
    %45 = vector.load %arg8[%c0_34, %c0_35] : memref<8x128xf32, #tpu.memory_space<vmem>>, vector<8x128xf32>
    tpu.vector_store %arg8[%c0_34, %c0_35], %44 {strides = array<i32>} : memref<8x128xf32, #tpu.memory_space<vmem>>, vector<8x128xf32>,
    return
  }
  func.func @transform_0(%arg0: i32) -> (i32, i32) {
    %c0_i32 = arith.constant 0 : i32
    %c0_i32_0 = arith.constant 0 : i32
    return %arg0, %c0_i32 : i32, i32
  }
  func.func @transform_1(%arg0: i32) -> (i32, i32) {
    %c0_i32 = arith.constant 0 : i32
    %c0_i32_0 = arith.constant 0 : i32
    %c0_i32_1 = arith.constant 0 : i32
    return %c0_i32, %c0_i32_0 : i32, i32
  }
  func.func @transform_2(%arg0: i32) -> (i32, i32) {
    %c0_i32 = arith.constant 0 : i32
    %c0_i32_0 = arith.constant 0 : i32
    %c0_i32_1 = arith.constant 0 : i32
    return %c0_i32, %c0_i32_0 : i32, i32
  }
  func.func @transform_3(%arg0: i32) -> (i32, i32, i32) {
    %c0_i32 = arith.constant 0 : i32
    %c0_i32_0 = arith.constant 0 : i32
    %c0_i32_1 = arith.constant 0 : i32
    %c0_i32_2 = arith.constant 0 : i32
    return %c0_i32, %c0_i32_0, %c0_i32_1 : i32, i32, i32
  }
  func.func @transform_4(%arg0: i32) -> (i32, i32, i32) {
    %c0_i32 = arith.constant 0 : i32
    %c0_i32_0 = arith.constant 0 : i32
    %c0_i32_1 = arith.constant 0 : i32
    %c0_i32_2 = arith.constant 0 : i32
    return %c0_i32, %c0_i32_0, %c0_i32_1 : i32, i32, i32
  }
  func.func @transform_5(%arg0: i32) -> (i32, i32) {
    %c0_i32 = arith.constant 0 : i32
    %c0_i32_0 = arith.constant 0 : i32
    %c0_i32_1 = arith.constant 0 : i32
    return %c0_i32, %c0_i32_0 : i32, i32
  }
  func.func @transform_6(%arg0: i32) -> (i32, i32) {
    %c0_i32 = arith.constant 0 : i32
    %c0_i32_0 = arith.constant 0 : i32
    %c0_i32_1 = arith.constant 0 : i32
    return %c0_i32, %c0_i32_0 : i32, i32
  }
  func.func @transform_7(%arg0: i32) -> (i32, i32) {
    %c0_i32 = arith.constant 0 : i32
    %c0_i32_0 = arith.constant 0 : i32
    return %arg0, %c0_i32 : i32, i32
  }
}

</mosaic_0001>

<bundles_post_ra>
// kernel: _dnn_forward_impl.1
= control target key start
LH: loop header
LB: loop body
LE: loop exit
PB: predicated region body
PF: predicated region fallthrough
CT: control target
= control target key end

     0   :  { %12 = vsyncpa [#allocation4], 0  ;;  %s662_s0 = inlined_call_operand.vmem [shape: bf16[8,128], index: 0, kind: input, shape index: {}]   ;;  %s663_s1 = inlined_call_operand.hbm [shape: bf16[128,128], index: 1, kind: input, shape index: {}]   ;;  %s664_s2 = inlined_call_operand.vmem [shape: f32[1,128], index: 2, kind: input, shape index: {}]   ;;  %s665_s3 = inlined_call_operand.hbm [shape: bf16[1,128,128], index: 3, kind: input, shape index: {}]   ;;  %s666_s4 = inlined_call_operand.vmem [shape: f32[1,1,128], index: 4, kind: input, shape index: {}]   ;;  %s667_s5 = inlined_call_operand.hbm [shape: bf16[128,128], index: 5, kind: input, shape index: {}]   ;;  %s668_s6 = inlined_call_operand.vmem [shape: f32[1,128], index: 6, kind: input, shape index: {}]   ;;  %s669_s7 = inlined_call_operand.hbm [shape: f32[8,128], index: 7, kind: output, shape index: {}]  }
   0x1   :  { %13 = vsyncpa [#allocation7], 0 }
   0x2   :  { %14 = vsyncpa [#allocation5], 0  ;;  %s36_s26 = sshll.u32 %s665_s3, 4  ;;  %s592_s27 = smov [#allocation6]   ;;  %s37_s26 = int_to_ptr.hbm [resolvable:$true] %s36_s26 }
   0x3   :  { %s38_s28 = sshll.u32 %s592_s27, 4  ;;  %s21_s8 = sshll.u32 %s663_s1, 4  ;;  %s39_s28 = int_to_ptr.vmem [resolvable:$true] %s38_s28  ;;  %s22_s8 = int_to_ptr.hbm [resolvable:$true] %s21_s8 }
   0x4   :  { %s593_s9 = smov 64   ;;  %s594_s10 = smov 4  }
   0x5   :  { %44 = dma.hbm_to_vmem [thread:$0]  %s37_s26, 1024, %s39_s28, [#allocation7], %s593_s9, %s593_s9, %s594_s10  }
   0x6   :  { %s595_s11 = smov [#allocation3]   ;;  %s51_s15 = sshll.u32 %s667_s5, 4  ;;  %s52_s15 = int_to_ptr.hbm [resolvable:$true] %s51_s15 }
   0x7   :  { %s23_s12 = sshll.u32 %s595_s11, 4  ;;  %s596_s3 = smov [#allocation8]   ;;  %s24_s12 = int_to_ptr.vmem [resolvable:$true] %s23_s12 }
   0x8   :  { %29 = dma.hbm_to_vmem [thread:$0]  %s22_s8, 1024, %s24_s12, [#allocation4], %s593_s9, %s593_s9, %s594_s10  }
   0x9   :  { %s53_s16 = sshll.u32 %s596_s3, 4  ;;  %s54_s16 = int_to_ptr.vmem [resolvable:$true] %s53_s16 }
   0xa   :  { %59 = dma.hbm_to_vmem [thread:$0]  %s52_s15, 1024, %s54_s16, [#allocation7], %s593_s9, %s593_s9, %s594_s10  }
   0xb   :  { %586 = dma.done.wait [#allocation4], 1024  }
   0xc   :  { %587 = vsyncadd [#allocation4], 4294966272 }
   0xd   :  { %588 = dma.done.wait [#allocation7], 2048  }
   0xe   :  { %589 = vsyncadd [#allocation7], 4294965248  ;;  %v458_v0 = vld [vmem:[#allocation3 + $0x38] sm:$0xff]  ;;  %v457_v1 = vld [vmem:[#allocation3 + $0x30] sm:$0xff]  ;;  %s344_s24 = sshll.u32 %s669_s7, 4  ;;  %s345_s24 = int_to_ptr.hbm [resolvable:$true] %s344_s24 }
   0xf   :  { %143 = vmatpush.bf16.msra.mxu0 %v458_v0  ;;  %v466_v2 = vld [vmem:[#allocation6 + $0x38] sm:$0xff]  ;;  %v465_v3 = vld [vmem:[#allocation6 + $0x30] sm:$0xff]  ;;  %v456_v4 = vld [vmem:[#allocation3 + $0x28] sm:$0xff] }
  0x10   :  { %231 = vmatpush.bf16.msra.mxu1 %v466_v2  ;;  %v455_v5 = vld [vmem:[#allocation3 + $0x20] sm:$0xff]  ;;  %v454_v6 = vld [vmem:[#allocation3 + $0x18] sm:$0xff]  ;;  %v453_v7 = vld [vmem:[#allocation3 + $0x10] sm:$0xff] }
  0x11   :  { %v452_v8 = vld [vmem:[#allocation3 + $0x8] sm:$0xff]  ;;  %v451_v9 = vld [vmem:[#allocation3] sm:$0xff]  ;;  %v74_v10 = vld [vmem:[%s662_s0] sm:$0xf] }
  0x12   :  { %v464_v11 = vld [vmem:[#allocation6 + $0x28] sm:$0xff]  ;;  %v463_v12 = vld [vmem:[#allocation6 + $0x20] sm:$0xff]  ;;  %v462_v13 = vld [vmem:[#allocation6 + $0x18] sm:$0xff] }
  0x13   :  { %144 = vmatpush.bf16.msra.mxu0 %v457_v1  ;;  %v461_v14 = vld [vmem:[#allocation6 + $0x10] sm:$0xff]  ;;  %v460_v15 = vld [vmem:[#allocation6 + $0x8] sm:$0xff]  ;;  %v459_v16 = vld [vmem:[#allocation6] sm:$0xff] }
  0x14   :  { %232 = vmatpush.bf16.msra.mxu1 %v465_v3  ;;  %v474_v17 = vld [vmem:[#allocation8 + $0x38] sm:$0xff]  ;;  %v473_v18 = vld [vmem:[#allocation8 + $0x30] sm:$0xff]  ;;  %v472_v29 = vld [vmem:[#allocation8 + $0x28] sm:$0xff] }
  0x15   :  { %319 = vmatpush.bf16.msra.mxu2 %v474_v17  ;;  %v481_v19 = vld [vmem:[%s664_s2] ss:$0 sm:$0xff]  ;;  %v471_v30 = vld [vmem:[#allocation8 + $0x20] sm:$0xff]  ;;  %v469_v32 = vld [vmem:[#allocation8 + $0x10] sm:$0xff] }
  0x16   :  { %v470_v31 = vld [vmem:[#allocation8 + $0x18] sm:$0xff]  ;;  %v468_v33 = vld [vmem:[#allocation8 + $0x8] sm:$0xff]  ;;  %v467_v34 = vld [vmem:[#allocation8] sm:$0xff] }
  0x17   :  { %145 = vmatpush.bf16.msra.mxu0 %v456_v4  ;;  %v482_v35 = vld [vmem:[%s666_s4] ss:$0 sm:$0xff]  ;;  %s597_s4 = smov [#allocation9]  }
  0x18   :  { %233 = vmatpush.bf16.msra.mxu1 %v464_v11  ;;  %v483_v45 = vld [vmem:[%s668_s6] ss:$0 sm:$0xff]  ;;  %s342_s21 = sshll.u32 %s597_s4, 4  ;;  %s343_s21 = int_to_ptr.vmem [resolvable:$true] %s342_s21 }
  0x19   :  { %320 = vmatpush.bf16.msra.mxu2 %v473_v18 }
  0x1b   :  { %146 = vmatpush.bf16.msra.mxu0 %v455_v5 }
  0x1c   :  { %234 = vmatpush.bf16.msra.mxu1 %v463_v12 }
  0x1d   :  { %321 = vmatpush.bf16.msra.mxu2 %v472_v29 }
  0x1f   :  { %147 = vmatpush.bf16.msra.mxu0 %v454_v6 }
  0x20   :  { %235 = vmatpush.bf16.msra.mxu1 %v462_v13 }
  0x21   :  { %322 = vmatpush.bf16.msra.mxu2 %v471_v30 }
  0x23   :  { %148 = vmatpush.bf16.msra.mxu0 %v453_v7 }
  0x24   :  { %236 = vmatpush.bf16.msra.mxu1 %v461_v14 }
  0x25   :  { %323 = vmatpush.bf16.msra.mxu2 %v470_v31 }
  0x27   :  { %149 = vmatpush.bf16.msra.mxu0 %v452_v8 }
  0x28   :  { %237 = vmatpush.bf16.msra.mxu1 %v460_v15 }
  0x29   :  { %324 = vmatpush.bf16.msra.mxu2 %v469_v32 }
  0x2b   :  { %150 = vmatpush.bf16.msra.mxu0 %v451_v9 }
  0x2c   :  { %238 = vmatpush.bf16.msra.mxu1 %v459_v16 }
  0x2d   :  { %325 = vmatpush.bf16.msra.mxu2 %v468_v33 }
  0x2e   :  { %151 = vmatmul.bf16.vlgmr.msra.gmra.mxu0 %v74_v10 }
  0x31   :  { %326 = vmatpush.bf16.msra.mxu2 %v467_v34 }
  0xab   :  { %v152_v20 = vpop.f32.mrf.mxu0 }
  0xac   :  { %v153_v21 = vadd.f32 %v481_v19, %v152_v20 }
  0xae   :  { %v156_v22 = vmul.f32 0.5, %v153_v21 }
  0xb0   :  { %484 = vtanh.f32 %v156_v22 }
  0xb3   :  { %v154_v23 = vpop.f32.mrf.mxu0 }
  0xb6   :  { %v485_v24 = vpop.eup %484 }
  0xb7   :  { %v158_v25 = vadd.f32 1.0, %v485_v24 }
  0xb9   :  { %v159_v26 = vmul.f32 0.5, %v158_v25 }
  0xbb   :  { %v160_v27 = vpack.c.bf16 %v159_v26, %v159_v26 }
  0xbd   :  { %161 = vst [vmem:[#allocation2] sm:$0xf] %v160_v27 }
  0xc4   :  { %v162_v28 = vld [vmem:[#allocation2] sm:$0xf] }
  0xc5   :  { %239 = vmatmul.bf16.vlgmr.msra.gmra.mxu1 %v162_v28 }
 0x142   :  { %v240_v36 = vpop.f32.mrf.mxu1 }
 0x143   :  { %v241_v37 = vadd.f32 %v482_v35, %v240_v36 }
 0x145   :  { %v244_v38 = vmul.f32 0.5, %v241_v37 }
 0x147   :  { %486 = vtanh.f32 %v244_v38 }
 0x14a   :  { %v242_v39 = vpop.f32.mrf.mxu1 }
 0x14d   :  { %v487_v40 = vpop.eup %486 }
 0x14e   :  { %v246_v41 = vadd.f32 1.0, %v487_v40 }
 0x150   :  { %v247_v42 = vmul.f32 0.5, %v246_v41 }
 0x152   :  { %v248_v43 = vpack.c.bf16 %v247_v42, %v247_v42 }
 0x154   :  { %249 = vst [vmem:[#allocation2] sm:$0xf] %v248_v43 }
 0x15b   :  { %v250_v44 = vld [vmem:[#allocation2] sm:$0xf] }
 0x15c   :  { %327 = vmatmul.bf16.vlgmr.msra.gmra.mxu2 %v250_v44 }
 0x1df   :  { %v328_v46 = vpop.f32.mrf.mxu2 }
 0x1e0   :  { %v329_v47 = vadd.f32 %v483_v45, %v328_v46 }
 0x1e2   :  { %v332_v48 = vmul.f32 0.5, %v329_v47 }
 0x1e4   :  { %488 = vtanh.f32 %v332_v48 }
 0x1e7   :  { %v330_v49 = vpop.f32.mrf.mxu2 }
 0x1ea   :  { %v489_v50 = vpop.eup %488 }
 0x1eb   :  { %v334_v51 = vadd.f32 1.0, %v489_v50 }
 0x1ed   :  { %v335_v52 = vmul.f32 0.5, %v334_v51 }
 0x1ef   :  { %336 = vst [vmem:[#allocation9] sm:$0xff] %v335_v52 }
 0x1f0   :  { %347 = dma.vmem_to_hbm [thread:$0]  %s343_s21, 128, %s345_s24, [#allocation5]  }
 0x1f1   :  { %590 = dma.done.wait [#allocation5], 128  }
 0x1f2   :  { %591 = vsyncadd [#allocation5], 4294967168 }
 0x1f3   :  { %352 = vsyncpa [#allocation4], 1 }
 0x1f4   :  { %353 = vsyncpa [#allocation7], 1 }
 0x1f5   :  { %354 = vsyncpa [#allocation5], 1 }

// kernel: _dnn_forward_impl.1
= control target key start
LH: loop header
LB: loop body
LE: loop exit
PB: predicated region body
PF: predicated region fallthrough
CT: control target
= control target key end

     0   :  { %12 = vsyncpa [#allocation4], 0  ;;  %s662_s0 = inlined_call_operand.vmem [shape: bf16[8,128], index: 0, kind: input, shape index: {}]   ;;  %s663_s1 = inlined_call_operand.hbm [shape: bf16[128,128], index: 1, kind: input, shape index: {}]   ;;  %s664_s2 = inlined_call_operand.vmem [shape: f32[1,128], index: 2, kind: input, shape index: {}]   ;;  %s665_s3 = inlined_call_operand.hbm [shape: bf16[1,128,128], index: 3, kind: input, shape index: {}]   ;;  %s666_s4 = inlined_call_operand.vmem [shape: f32[1,1,128], index: 4, kind: input, shape index: {}]   ;;  %s667_s5 = inlined_call_operand.hbm [shape: bf16[128,128], index: 5, kind: input, shape index: {}]   ;;  %s668_s6 = inlined_call_operand.vmem [shape: f32[1,128], index: 6, kind: input, shape index: {}]   ;;  %s669_s7 = inlined_call_operand.hbm [shape: f32[8,128], index: 7, kind: output, shape index: {}]  }
   0x1   :  { %13 = vsyncpa [#allocation7], 0 }
   0x2   :  { %14 = vsyncpa [#allocation5], 0  ;;  %s36_s26 = sshll.u32 %s665_s3, 4  ;;  %s592_s27 = smov [#allocation6]   ;;  %s37_s26 = int_to_ptr.hbm [resolvable:$true] %s36_s26 }
   0x3   :  { %s38_s28 = sshll.u32 %s592_s27, 4  ;;  %s21_s8 = sshll.u32 %s663_s1, 4  ;;  %s39_s28 = int_to_ptr.vmem [resolvable:$true] %s38_s28  ;;  %s22_s8 = int_to_ptr.hbm [resolvable:$true] %s21_s8 }
   0x4   :  { %s593_s9 = smov 64   ;;  %s594_s10 = smov 4  }
   0x5   :  { %44 = dma.hbm_to_vmem [thread:$0]  %s37_s26, 1024, %s39_s28, [#allocation7], %s593_s9, %s593_s9, %s594_s10  }
   0x6   :  { %s595_s11 = smov [#allocation3]   ;;  %s51_s15 = sshll.u32 %s667_s5, 4  ;;  %s52_s15 = int_to_ptr.hbm [resolvable:$true] %s51_s15 }
   0x7   :  { %s23_s12 = sshll.u32 %s595_s11, 4  ;;  %s596_s3 = smov [#allocation8]   ;;  %s24_s12 = int_to_ptr.vmem [resolvable:$true] %s23_s12 }
   0x8   :  { %29 = dma.hbm_to_vmem [thread:$0]  %s22_s8, 1024, %s24_s12, [#allocation4], %s593_s9, %s593_s9, %s594_s10  }
   0x9   :  { %s53_s16 = sshll.u32 %s596_s3, 4  ;;  %s54_s16 = int_to_ptr.vmem [resolvable:$true] %s53_s16 }
   0xa   :  { %59 = dma.hbm_to_vmem [thread:$0]  %s52_s15, 1024, %s54_s16, [#allocation7], %s593_s9, %s593_s9, %s594_s10  }
   0xb   :  { %586 = dma.done.wait [#allocation4], 1024  }
   0xc   :  { %587 = vsyncadd [#allocation4], 4294966272 }
   0xd   :  { %588 = dma.done.wait [#allocation7], 2048  }
   0xe   :  { %589 = vsyncadd [#allocation7], 4294965248  ;;  %v458_v0 = vld [vmem:[#allocation3 + $0x38] sm:$0xff]  ;;  %v457_v1 = vld [vmem:[#allocation3 + $0x30] sm:$0xff]  ;;  %s344_s24 = sshll.u32 %s669_s7, 4  ;;  %s345_s24 = int_to_ptr.hbm [resolvable:$true] %s344_s24 }
   0xf   :  { %143 = vmatpush.bf16.msra.mxu0 %v458_v0  ;;  %v466_v2 = vld [vmem:[#allocation6 + $0x38] sm:$0xff]  ;;  %v465_v3 = vld [vmem:[#allocation6 + $0x30] sm:$0xff]  ;;  %v456_v4 = vld [vmem:[#allocation3 + $0x28] sm:$0xff] }
  0x10   :  { %231 = vmatpush.bf16.msra.mxu1 %v466_v2  ;;  %v455_v5 = vld [vmem:[#allocation3 + $0x20] sm:$0xff]  ;;  %v454_v6 = vld [vmem:[#allocation3 + $0x18] sm:$0xff]  ;;  %v453_v7 = vld [vmem:[#allocation3 + $0x10] sm:$0xff] }
  0x11   :  { %v452_v8 = vld [vmem:[#allocation3 + $0x8] sm:$0xff]  ;;  %v451_v9 = vld [vmem:[#allocation3] sm:$0xff]  ;;  %v74_v10 = vld [vmem:[%s662_s0] sm:$0xf] }
  0x12   :  { %v464_v11 = vld [vmem:[#allocation6 + $0x28] sm:$0xff]  ;;  %v463_v12 = vld [vmem:[#allocation6 + $0x20] sm:$0xff]  ;;  %v462_v13 = vld [vmem:[#allocation6 + $0x18] sm:$0xff] }
  0x13   :  { %144 = vmatpush.bf16.msra.mxu0 %v457_v1  ;;  %v461_v14 = vld [vmem:[#allocation6 + $0x10] sm:$0xff]  ;;  %v460_v15 = vld [vmem:[#allocation6 + $0x8] sm:$0xff]  ;;  %v459_v16 = vld [vmem:[#allocation6] sm:$0xff] }
  0x14   :  { %232 = vmatpush.bf16.msra.mxu1 %v465_v3  ;;  %v474_v17 = vld [vmem:[#allocation8 + $0x38] sm:$0xff]  ;;  %v473_v18 = vld [vmem:[#allocation8 + $0x30] sm:$0xff]  ;;  %v472_v29 = vld [vmem:[#allocation8 + $0x28] sm:$0xff] }
  0x15   :  { %319 = vmatpush.bf16.msra.mxu2 %v474_v17  ;;  %v481_v19 = vld [vmem:[%s664_s2] ss:$0 sm:$0xff]  ;;  %v471_v30 = vld [vmem:[#allocation8 + $0x20] sm:$0xff]  ;;  %v469_v32 = vld [vmem:[#allocation8 + $0x10] sm:$0xff] }
  0x16   :  { %v470_v31 = vld [vmem:[#allocation8 + $0x18] sm:$0xff]  ;;  %v468_v33 = vld [vmem:[#allocation8 + $0x8] sm:$0xff]  ;;  %v467_v34 = vld [vmem:[#allocation8] sm:$0xff] }
  0x17   :  { %145 = vmatpush.bf16.msra.mxu0 %v456_v4  ;;  %v482_v35 = vld [vmem:[%s666_s4] ss:$0 sm:$0xff]  ;;  %s597_s4 = smov [#allocation9]  }
  0x18   :  { %233 = vmatpush.bf16.msra.mxu1 %v464_v11  ;;  %v483_v45 = vld [vmem:[%s668_s6] ss:$0 sm:$0xff]  ;;  %s342_s21 = sshll.u32 %s597_s4, 4  ;;  %s343_s21 = int_to_ptr.vmem [resolvable:$true] %s342_s21 }
  0x19   :  { %320 = vmatpush.bf16.msra.mxu2 %v473_v18 }
  0x1b   :  { %146 = vmatpush.bf16.msra.mxu0 %v455_v5 }
  0x1c   :  { %234 = vmatpush.bf16.msra.mxu1 %v463_v12 }
  0x1d   :  { %321 = vmatpush.bf16.msra.mxu2 %v472_v29 }
  0x1f   :  { %147 = vmatpush.bf16.msra.mxu0 %v454_v6 }
  0x20   :  { %235 = vmatpush.bf16.msra.mxu1 %v462_v13 }
  0x21   :  { %322 = vmatpush.bf16.msra.mxu2 %v471_v30 }
  0x23   :  { %148 = vmatpush.bf16.msra.mxu0 %v453_v7 }
  0x24   :  { %236 = vmatpush.bf16.msra.mxu1 %v461_v14 }
  0x25   :  { %323 = vmatpush.bf16.msra.mxu2 %v470_v31 }
  0x27   :  { %149 = vmatpush.bf16.msra.mxu0 %v452_v8 }
  0x28   :  { %237 = vmatpush.bf16.msra.mxu1 %v460_v15 }
  0x29   :  { %324 = vmatpush.bf16.msra.mxu2 %v469_v32 }
  0x2b   :  { %150 = vmatpush.bf16.msra.mxu0 %v451_v9 }
  0x2c   :  { %238 = vmatpush.bf16.msra.mxu1 %v459_v16 }
  0x2d   :  { %325 = vmatpush.bf16.msra.mxu2 %v468_v33 }
  0x2e   :  { %151 = vmatmul.bf16.vlgmr.msra.gmra.mxu0 %v74_v10 }
  0x31   :  { %326 = vmatpush.bf16.msra.mxu2 %v467_v34 }
  0xab   :  { %v152_v20 = vpop.f32.mrf.mxu0 }
  0xac   :  { %v153_v21 = vadd.f32 %v481_v19, %v152_v20 }
  0xae   :  { %v156_v22 = vmul.f32 0.5, %v153_v21 }
  0xb0   :  { %484 = vtanh.f32 %v156_v22 }
  0xb3   :  { %v154_v23 = vpop.f32.mrf.mxu0 }
  0xb6   :  { %v485_v24 = vpop.eup %484 }
  0xb7   :  { %v158_v25 = vadd.f32 1.0, %v485_v24 }
  0xb9   :  { %v159_v26 = vmul.f32 0.5, %v158_v25 }
  0xbb   :  { %v160_v27 = vpack.c.bf16 %v159_v26, %v159_v26 }
  0xbd   :  { %161 = vst [vmem:[#allocation2] sm:$0xf] %v160_v27 }
  0xc4   :  { %v162_v28 = vld [vmem:[#allocation2] sm:$0xf] }
  0xc5   :  { %239 = vmatmul.bf16.vlgmr.msra.gmra.mxu1 %v162_v28 }
 0x142   :  { %v240_v36 = vpop.f32.mrf.mxu1 }
 0x143   :  { %v241_v37 = vadd.f32 %v482_v35, %v240_v36 }
 0x145   :  { %v244_v38 = vmul.f32 0.5, %v241_v37 }
 0x147   :  { %486 = vtanh.f32 %v244_v38 }
 0x14a   :  { %v242_v39 = vpop.f32.mrf.mxu1 }
 0x14d   :  { %v487_v40 = vpop.eup %486 }
 0x14e   :  { %v246_v41 = vadd.f32 1.0, %v487_v40 }
 0x150   :  { %v247_v42 = vmul.f32 0.5, %v246_v41 }
 0x152   :  { %v248_v43 = vpack.c.bf16 %v247_v42, %v247_v42 }
 0x154   :  { %249 = vst [vmem:[#allocation2] sm:$0xf] %v248_v43 }
 0x15b   :  { %v250_v44 = vld [vmem:[#allocation2] sm:$0xf] }
 0x15c   :  { %327 = vmatmul.bf16.vlgmr.msra.gmra.mxu2 %v250_v44 }
 0x1df   :  { %v328_v46 = vpop.f32.mrf.mxu2 }
 0x1e0   :  { %v329_v47 = vadd.f32 %v483_v45, %v328_v46 }
 0x1e2   :  { %v332_v48 = vmul.f32 0.5, %v329_v47 }
 0x1e4   :  { %488 = vtanh.f32 %v332_v48 }
 0x1e7   :  { %v330_v49 = vpop.f32.mrf.mxu2 }
 0x1ea   :  { %v489_v50 = vpop.eup %488 }
 0x1eb   :  { %v334_v51 = vadd.f32 1.0, %v489_v50 }
 0x1ed   :  { %v335_v52 = vmul.f32 0.5, %v334_v51 }
 0x1ef   :  { %336 = vst [vmem:[#allocation9] sm:$0xff] %v335_v52 }
 0x1f0   :  { %347 = dma.vmem_to_hbm [thread:$0]  %s343_s21, 128, %s345_s24, [#allocation5]  }
 0x1f1   :  { %590 = dma.done.wait [#allocation5], 128  }
 0x1f2   :  { %591 = vsyncadd [#allocation5], 4294967168 }
 0x1f3   :  { %352 = vsyncpa [#allocation4], 1 }
 0x1f4   :  { %353 = vsyncpa [#allocation7], 1 }
 0x1f5   :  { %354 = vsyncpa [#allocation5], 1 }

</bundles_post_ra>
